<compile_context>
chip_gen: v5e
topology: v5e:2x2
jax: 0.10.0
libtpu: 0.0.40
codegen_flags: <defaults>
</compile_context>

<pallas_src>
import jax
import jax.numpy as jnp
import numpy as np
from jax.experimental import pallas as pl
from jax.experimental.pallas import tpu as pltpu

# Module hyperparameters: CNN_1D(word_dim, out_dim, kernel_size, conv_1d_out_dim)
WORD_DIM = 16              # Conv1d in_channels
OUT_DIM = 48               # Conv1d out_channels (divisible by KSIZE)
KSIZE = 3                  # conv kernel size AND MaxPool2d kernel along channel axis
CONV1D_OUT_DIM = 32        # Linear out features
POOLED = OUT_DIM // KSIZE  # Linear in features = int(out_dim / kernel_size)
PAD = (KSIZE - 1) // 2
BATCH = 2
SEQ = 16                   # conv output length == SEQ (odd K, padding=(K-1)//2)


def _round8(x):
    return -(-x // 8) * 8


# Static row offsets inside the packed parameter slab (all multiples of 8).
ROW_WG = 0                                   # K tap weights, pool-grouped rows
ROW_B = _round8(KSIZE * OUT_DIM)             # conv bias (grouped), stored as a column
ROW_LW = ROW_B + _round8(OUT_DIM)            # lin_w.T
ROW_LB = ROW_LW + _round8(POOLED)            # lin_b (one row)
SLAB_ROWS = _round8(ROW_LB + 1)
SLAB_COLS = max(WORD_DIM, CONV1D_OUT_DIM)


def cnn1d_fused_kernel(x_ref, p_ref, out_ref):
    """Fused Conv1d + ReLU + MaxPool2d((K,1)) + PyTorch-reshape + Linear + ReLU.

    x_ref  : (N, C_in, L)            raw NCL input (no wrapper transpose / pad)
    p_ref  : (SLAB_ROWS, SLAB_COLS)  packed parameter slab (see prepare_params)
    out_ref: (N*L, CONV1D_OUT_DIM)
    """
    n, cin, l = x_ref.shape

    # Static slices of the parameter slab (8-row-aligned -> free ref views).
    wks = [p_ref[ROW_WG + k * OUT_DIM:ROW_WG + (k + 1) * OUT_DIM, 0:WORD_DIM]
           for k in range(KSIZE)]                              # each (OUT_DIM, C_in)
    bg = p_ref[ROW_B:ROW_B + OUT_DIM, 0:1]                      # (OUT_DIM, 1)
    lwt = p_ref[ROW_LW:ROW_LW + POOLED, 0:CONV1D_OUT_DIM]       # (POOLED, D)
    lb = p_ref[ROW_LB:ROW_LB + 1, 0:CONV1D_OUT_DIM]             # (1, D)

    zpad = jnp.zeros((cin, PAD), jnp.float32)

    pooled_blocks = []
    for b in range(n):                         # N=2: unrolled at trace time
        xb = x_ref[b]                          # (C_in, L), channels on sublanes
        xb_pad = jnp.concatenate([zpad, xb, zpad], axis=1)      # (C_in, L+2*PAD)

        # Conv1d as K accumulated shifted matmuls (MXU has huge slack here).
        # Output rows are pre-grouped by pooling slot j: row j*POOLED + p holds
        # PyTorch conv channel p*KSIZE + j.
        y = jnp.dot(wks[0], xb_pad[:, 0:l], preferred_element_type=jnp.float32)
        for k in range(1, KSIZE):
            y = y + jnp.dot(wks[k], xb_pad[:, k:k + l],
                            preferred_element_type=jnp.float32)
        y = y + bg                              # conv bias (lane broadcast)

        # MaxPool2d((K,1)) over channel groups = aligned sublane-slice maxima,
        # then ReLU (ReLU commutes with max).
        pb = y[0:POOLED, :]
        for j in range(1, KSIZE):
            pb = jnp.maximum(pb, y[j * POOLED:(j + 1) * POOLED, :])
        pooled_blocks.append(jnp.maximum(pb, 0.0))              # (POOLED, L)

    # Stacking per-batch (POOLED, L) blocks along sublanes reproduces the
    # row-major layout of PyTorch's (N, POOLED, L) pooled tensor, so
    # `output.reshape(-1, POOLED)` is a plain reshape (a no-op when L == POOLED).
    pooled = jnp.concatenate(pooled_blocks, axis=0)             # (N*POOLED, L)
    flat = pooled.reshape(-1, POOLED)

    # Linear + ReLU, one MXU pass.
    z = jnp.dot(flat, lwt, preferred_element_type=jnp.float32) + lb
    out_ref[...] = jnp.maximum(z, 0.0)


def prepare_params(conv_w, conv_b, lin_w, lin_b):
    """One-time packing of all weights into a single f32 slab (hoisted out of
    the per-call path; cuts the kernel from 5 input DMAs to 2)."""
    o, cin, k = conv_w.shape
    d, p = lin_w.shape
    assert o == OUT_DIM and cin == WORD_DIM and k == KSIZE
    assert d == CONV1D_OUT_DIM and p == POOLED
    # Pool grouping and SAME padding assume these (guard per correctness review).
    assert OUT_DIM % KSIZE == 0 and KSIZE % 2 == 1 and OUT_DIM % 8 == 0

    # Grouped conv weights: wg row (k, j*POOLED + p) = conv_w[p*KSIZE + j, :, k]
    w = conv_w.reshape(POOLED, KSIZE, cin, KSIZE)                     # [p, j, c, k]
    wg = jnp.transpose(w, (3, 1, 0, 2)).reshape(KSIZE * OUT_DIM, cin)  # [(k, j*P+p), c]
    bg = conv_b.reshape(POOLED, KSIZE).T.reshape(OUT_DIM, 1)           # [j*P+p, 1]
    lwt = lin_w.T                                                      # (POOLED, D)
    lb = lin_b.reshape(1, CONV1D_OUT_DIM)

    slab = jnp.zeros((SLAB_ROWS, SLAB_COLS), jnp.float32)
    slab = slab.at[ROW_WG:ROW_WG + KSIZE * OUT_DIM, 0:WORD_DIM].set(wg)
    slab = slab.at[ROW_B:ROW_B + OUT_DIM, 0:1].set(bg)
    slab = slab.at[ROW_LW:ROW_LW + POOLED, 0:CONV1D_OUT_DIM].set(lwt)
    slab = slab.at[ROW_LB:ROW_LB + 1, 0:CONV1D_OUT_DIM].set(lb)
    return slab


@jax.jit
def cnn_1d_forward(vec, params):
    # vec: (N, WORD_DIM, L) -- raw PyTorch NCL layout, no wrapper HLOs at all.
    n, cin, seq = vec.shape
    vmem = pl.BlockSpec(memory_space=pltpu.MemorySpace.VMEM)
    flops = 2 * (n * seq * KSIZE * OUT_DIM * cin + n * seq * POOLED * CONV1D_OUT_DIM)
    bytes_accessed = (vec.size + params.size + n * seq * CONV1D_OUT_DIM) * 4
    out = pl.pallas_call(
        cnn1d_fused_kernel,
        out_shape=jax.ShapeDtypeStruct((n * seq, CONV1D_OUT_DIM), jnp.float32),
        in_specs=[vmem, vmem],
        out_specs=vmem,
        cost_estimate=pl.CostEstimate(
            flops=flops, transcendentals=0, bytes_accessed=bytes_accessed),
    )(vec, params)
    # TODO(synk): Dropout(p=0.5) layers are identity in eval mode; training-mode
    # stochastic dropout is not implemented.
    # TODO(synk): at BATCH=2 the call stays gridless (splitting a latency-bound
    # kernel across v7x's two TensorCores would be pure overhead); add a
    # 'parallel' batch grid axis only if the real workload batches up.
    return out


def ref_forward(vec, conv_w, conv_b, lin_w, lin_b):
    """Pure-JAX reference mirroring the PyTorch forward (eval mode)."""
    y = jax.lax.conv_general_dilated(
        vec, conv_w, window_strides=(1,), padding=[(PAD, PAD)],
        dimension_numbers=("NCH", "OIH", "NCH"))
    y = y + conv_b[None, :, None]
    y = jnp.maximum(y, 0.0)
    n, o, l = y.shape
    p = o // KSIZE
    y = y[:, :p * KSIZE, :].reshape(n, p, KSIZE, l).max(axis=2)  # MaxPool2d((K,1))
    flat = y.reshape(-1, p)                                      # row-major, as PyTorch
    z = flat @ lin_w.T + lin_b
    return jnp.maximum(z, 0.0)


if __name__ == "__main__":
    key = jax.random.PRNGKey(0)
    k_vec, k_cw, k_cb, k_lw, k_lb = jax.random.split(key, 5)

    vec = jax.random.normal(k_vec, (BATCH, WORD_DIM, SEQ), dtype=jnp.float32)
    conv_w = jax.random.normal(k_cw, (OUT_DIM, WORD_DIM, KSIZE), jnp.float32) * 0.1
    conv_b = jax.random.normal(k_cb, (OUT_DIM,), jnp.float32) * 0.1
    lin_w = jax.random.normal(k_lw, (CONV1D_OUT_DIM, POOLED), jnp.float32) * 0.1
    lin_b = jax.random.normal(k_lb, (CONV1D_OUT_DIM,), jnp.float32) * 0.1

    # All weight re-layouts computed once, outside the per-call jitted path.
    params = jax.block_until_ready(prepare_params(conv_w, conv_b, lin_w, lin_b))

    out = jax.block_until_ready(cnn_1d_forward(vec, params))

    ref = ref_forward(vec, conv_w, conv_b, lin_w, lin_b)
    assert out.shape == (BATCH * SEQ, CONV1D_OUT_DIM)
    np.testing.assert_allclose(np.asarray(out), np.asarray(ref), rtol=1e-5, atol=1e-5)
    print("KERNEL_OK")
</pallas_src>

<mosaic_0001>
module attributes {stable_mosaic.version = 11 : i64} {
  func.func @cnn1d_fused_kernel(%arg0: memref<2x16x16xf32, #tpu.memory_space<vmem>>, %arg1: memref<216x32xf32, #tpu.memory_space<vmem>>, %arg2: memref<32x32xf32, #tpu.memory_space<vmem>>) attributes {dimension_semantics = [], scalar_prefetch = 0 : i64, scratch_operands = 0 : i64, tpu.core_type = #tpu.core_type<tc>} {
    %c0 = arith.constant 0 : index
    %c0_0 = arith.constant 0 : index
    %0 = vector.load %arg1[%c0, %c0_0] : memref<216x32xf32, #tpu.memory_space<vmem>>, vector<48x16xf32>
    %c48 = arith.constant 48 : index
    %c0_1 = arith.constant 0 : index
    %1 = vector.load %arg1[%c48, %c0_1] : memref<216x32xf32, #tpu.memory_space<vmem>>, vector<48x16xf32>
    %c96 = arith.constant 96 : index
    %c0_2 = arith.constant 0 : index
    %2 = vector.load %arg1[%c96, %c0_2] : memref<216x32xf32, #tpu.memory_space<vmem>>, vector<48x16xf32>
    %c144 = arith.constant 144 : index
    %c0_3 = arith.constant 0 : index
    %3 = vector.load %arg1[%c144, %c0_3] : memref<216x32xf32, #tpu.memory_space<vmem>>, vector<48x1xf32>
    %c192 = arith.constant 192 : index
    %c0_4 = arith.constant 0 : index
    %4 = vector.load %arg1[%c192, %c0_4] : memref<216x32xf32, #tpu.memory_space<vmem>>, vector<16x32xf32>
    %c208 = arith.constant 208 : index
    %c0_5 = arith.constant 0 : index
    %5 = vector.load %arg1[%c208, %c0_5] : memref<216x32xf32, #tpu.memory_space<vmem>>, vector<1x32xf32>
    %cst = arith.constant 0.000000e+00 : f32
    %6 = vector.broadcast %cst : f32 to vector<16x1xf32>
    %c0_6 = arith.constant 0 : index
    %c0_7 = arith.constant 0 : index
    %c0_8 = arith.constant 0 : index
    %7 = vector.load %arg0[%c0_6, %c0_7, %c0_8] : memref<2x16x16xf32, #tpu.memory_space<vmem>>, vector<1x16x16xf32>
    %8 = vector.shape_cast %7 : vector<1x16x16xf32> to vector<16x16xf32>
    %9 = tpu.concatenate %6, %8, %6 in 1 : vector<16x1xf32>, vector<16x16xf32>, vector<16x1xf32> -> vector<16x18xf32>
    %10 = vector.extract_strided_slice %9 {offsets = [0, 0], sizes = [16, 16], strides = [1, 1]} : vector<16x18xf32> to vector<16x16xf32>
    %cst_9 = arith.constant dense<0.000000e+00> : vector<48x16xf32>
    %11 = tpu.matmul %0, %10, %cst_9 {dimension_numbers = #tpu.dot_dimension_numbers<[1], [0], [0], [1], [0, 0, 1, 1], [], []>} : vector<48x16xf32>, vector<16x16xf32>, vector<48x16xf32> -> vector<48x16xf32>
    %12 = vector.extract_strided_slice %9 {offsets = [0, 1], sizes = [16, 16], strides = [1, 1]} : vector<16x18xf32> to vector<16x16xf32>
    %cst_10 = arith.constant dense<0.000000e+00> : vector<48x16xf32>
    %13 = tpu.matmul %1, %12, %cst_10 {dimension_numbers = #tpu.dot_dimension_numbers<[1], [0], [0], [1], [0, 0, 1, 1], [], []>} : vector<48x16xf32>, vector<16x16xf32>, vector<48x16xf32> -> vector<48x16xf32>
    %14 = arith.addf %11, %13 : vector<48x16xf32>
    %15 = vector.extract_strided_slice %9 {offsets = [0, 2], sizes = [16, 16], strides = [1, 1]} : vector<16x18xf32> to vector<16x16xf32>
    %cst_11 = arith.constant dense<0.000000e+00> : vector<48x16xf32>
    %16 = tpu.matmul %2, %15, %cst_11 {dimension_numbers = #tpu.dot_dimension_numbers<[1], [0], [0], [1], [0, 0, 1, 1], [], []>} : vector<48x16xf32>, vector<16x16xf32>, vector<48x16xf32> -> vector<48x16xf32>
    %17 = arith.addf %14, %16 : vector<48x16xf32>
    %18 = vector.broadcast %3 : vector<48x1xf32> to vector<48x16xf32>
    %19 = arith.addf %17, %18 : vector<48x16xf32>
    %20 = vector.extract_strided_slice %19 {offsets = [0, 0], sizes = [16, 16], strides = [1, 1]} : vector<48x16xf32> to vector<16x16xf32>
    %21 = vector.extract_strided_slice %19 {offsets = [16, 0], sizes = [16, 16], strides = [1, 1]} : vector<48x16xf32> to vector<16x16xf32>
    %22 = arith.maximumf %20, %21 : vector<16x16xf32>
    %23 = vector.extract_strided_slice %19 {offsets = [32, 0], sizes = [16, 16], strides = [1, 1]} : vector<48x16xf32> to vector<16x16xf32>
    %24 = arith.maximumf %22, %23 : vector<16x16xf32>
    %cst_12 = arith.constant 0.000000e+00 : f32
    %25 = vector.broadcast %cst_12 : f32 to vector<16x16xf32>
    %26 = arith.maximumf %24, %25 : vector<16x16xf32>
    %c1 = arith.constant 1 : index
    %c0_13 = arith.constant 0 : index
    %c0_14 = arith.constant 0 : index
    %27 = vector.load %arg0[%c1, %c0_13, %c0_14] : memref<2x16x16xf32, #tpu.memory_space<vmem>>, vector<1x16x16xf32>
    %28 = vector.shape_cast %27 : vector<1x16x16xf32> to vector<16x16xf32>
    %29 = tpu.concatenate %6, %28, %6 in 1 : vector<16x1xf32>, vector<16x16xf32>, vector<16x1xf32> -> vector<16x18xf32>
    %30 = vector.extract_strided_slice %29 {offsets = [0, 0], sizes = [16, 16], strides = [1, 1]} : vector<16x18xf32> to vector<16x16xf32>
    %cst_15 = arith.constant dense<0.000000e+00> : vector<48x16xf32>
    %31 = tpu.matmul %0, %30, %cst_15 {dimension_numbers = #tpu.dot_dimension_numbers<[1], [0], [0], [1], [0, 0, 1, 1], [], []>} : vector<48x16xf32>, vector<16x16xf32>, vector<48x16xf32> -> vector<48x16xf32>
    %32 = vector.extract_strided_slice %29 {offsets = [0, 1], sizes = [16, 16], strides = [1, 1]} : vector<16x18xf32> to vector<16x16xf32>
    %cst_16 = arith.constant dense<0.000000e+00> : vector<48x16xf32>
    %33 = tpu.matmul %1, %32, %cst_16 {dimension_numbers = #tpu.dot_dimension_numbers<[1], [0], [0], [1], [0, 0, 1, 1], [], []>} : vector<48x16xf32>, vector<16x16xf32>, vector<48x16xf32> -> vector<48x16xf32>
    %34 = arith.addf %31, %33 : vector<48x16xf32>
    %35 = vector.extract_strided_slice %29 {offsets = [0, 2], sizes = [16, 16], strides = [1, 1]} : vector<16x18xf32> to vector<16x16xf32>
    %cst_17 = arith.constant dense<0.000000e+00> : vector<48x16xf32>
    %36 = tpu.matmul %2, %35, %cst_17 {dimension_numbers = #tpu.dot_dimension_numbers<[1], [0], [0], [1], [0, 0, 1, 1], [], []>} : vector<48x16xf32>, vector<16x16xf32>, vector<48x16xf32> -> vector<48x16xf32>
    %37 = arith.addf %34, %36 : vector<48x16xf32>
    %38 = vector.broadcast %3 : vector<48x1xf32> to vector<48x16xf32>
    %39 = arith.addf %37, %38 : vector<48x16xf32>
    %40 = vector.extract_strided_slice %39 {offsets = [0, 0], sizes = [16, 16], strides = [1, 1]} : vector<48x16xf32> to vector<16x16xf32>
    %41 = vector.extract_strided_slice %39 {offsets = [16, 0], sizes = [16, 16], strides = [1, 1]} : vector<48x16xf32> to vector<16x16xf32>
    %42 = arith.maximumf %40, %41 : vector<16x16xf32>
    %43 = vector.extract_strided_slice %39 {offsets = [32, 0], sizes = [16, 16], strides = [1, 1]} : vector<48x16xf32> to vector<16x16xf32>
    %44 = arith.maximumf %42, %43 : vector<16x16xf32>
    %cst_18 = arith.constant 0.000000e+00 : f32
    %45 = vector.broadcast %cst_18 : f32 to vector<16x16xf32>
    %46 = arith.maximumf %44, %45 : vector<16x16xf32>
    %47 = tpu.concatenate %26, %46 in 0 : vector<16x16xf32>, vector<16x16xf32> -> vector<32x16xf32>
    %cst_19 = arith.constant dense<0.000000e+00> : vector<32x32xf32>
    %48 = tpu.matmul %47, %4, %cst_19 {dimension_numbers = #tpu.dot_dimension_numbers<[1], [0], [0], [1], [0, 0, 1, 1], [], []>} : vector<32x16xf32>, vector<16x32xf32>, vector<32x32xf32> -> vector<32x32xf32>
    %49 = vector.broadcast %5 : vector<1x32xf32> to vector<32x32xf32>
    %50 = arith.addf %48, %49 : vector<32x32xf32>
    %cst_20 = arith.constant 0.000000e+00 : f32
    %51 = vector.broadcast %cst_20 : f32 to vector<32x32xf32>
    %52 = arith.maximumf %50, %51 : vector<32x32xf32>
    %c0_21 = arith.constant 0 : index
    %c0_22 = arith.constant 0 : index
    %53 = vector.load %arg2[%c0_21, %c0_22] : memref<32x32xf32, #tpu.memory_space<vmem>>, vector<32x32xf32>
    tpu.vector_store %arg2[%c0_21, %c0_22], %52 {strides = array<i32>} : memref<32x32xf32, #tpu.memory_space<vmem>>, vector<32x32xf32>,
    return
  }
}

</mosaic_0001>

<bundles_post_ra>
// kernel: cnn_1d_forward.1
= control target key start
LH: loop header
LB: loop body
LE: loop exit
PB: predicated region body
PF: predicated region fallthrough
CT: control target
= control target key end

     0   :  { %s605_s13 = smov 1   ;;  %s801_s0 = inlined_call_operand.vmem [shape: f32[2,16,16], index: 0, kind: input, shape index: {}]   ;;  %s802_s1 = inlined_call_operand.vmem [shape: f32[216,32], index: 1, kind: input, shape index: {}]   ;;  %s803_s2 = inlined_call_operand.hbm [shape: f32[32,32], index: 2, kind: output, shape index: {}]  }
   0x1   :  { %v519_v0 = vld [vmem:[%s801_s0 + $0x18] sm:$0xff]  ;;  %v40_v1 = vld [vmem:[%s801_s0 + $0x8] sm:$0xff] }
   0x2   :  { %284 = vrot.lane.b32.xlu1 %v519_v0, %s605_s13  ;;  %45 = vrot.lane.b32.xlu0 %v40_v1, %s605_s13 }
   0x3   :  { %7 = vsyncpa [#allocation3], 0  ;;  %v518_v2 = vld [vmem:[%s801_s0 + $0x10] sm:$0xff]  ;;  %v39_v3 = vld [vmem:[%s801_s0] sm:$0xff]  ;;  %vm49_vm0 = vcmask 7168   ;;  %vm52_vm1 = vcmask 138240  }
   0x4   :  { %s606_s0 = smov 126   ;;  %s607_s18 = smov 127   ;;  %vm63_vm2 = vcmask 130048   ;;  %v648_v18 = vld [vmem:[%s802_s1] sm:$0xff]  ;;  %v655_v19 = vld [vmem:[%s802_s1 + $0x8] sm:$0xff]  ;;  %v662_v20 = vld [vmem:[%s802_s1 + $0x10] sm:$0xff] }
   0x5   :  { %v669_v24 = vld [vmem:[%s802_s1 + $0x50] sm:$0xff]  ;;  %v677_v26 = vld [vmem:[%s802_s1 + $0x18] sm:$0xff]  ;;  %v24_v31 = vld [vmem:[%s802_s1 + $0x60] sm:$0xff]  ;;  %v608_v35 = vmov 0   ;;  %vm475_vm3 = vcmask 261120   ;;  %s609_s16 = smov [#allocation2]  }
   0x6   :  { %v18_v25 = vld [vmem:[%s802_s1 + $0x30] sm:$0xff]  ;;  %v691_v30 = vld [vmem:[%s802_s1 + $0x58] sm:$0xff]  ;;  %v32_v34 = vld [vmem:[%s802_s1 + $0xa0] sm:$0xff]  ;;  %577 = vset.pattern.permute.xlu1 %v608_v35  ;;  %576 = vset.pattern.permute.xlu0 %v608_v35  ;;  %s484_s17 = sshll.u32 %s609_s16, 4  ;;  %s610_s19 = smov 128   ;;  %s485_s17 = int_to_ptr.vmem [resolvable:$true] %s484_s17 }
   0x7   :  { %v19_v32 = vld [vmem:[%s802_s1 + $0x38] sm:$0xff]  ;;  %v34_v33 = vld [vmem:[%s802_s1 + $0xb0] sm:$0xff]  ;;  %575 = vset.pattern.permute.xlu2 %v608_v35  ;;  %v16_v36 = vld [vmem:[%s802_s1 + $0x20] sm:$0xff]  ;;  %s611_s20 = smov 8  }
   0x8   :  { %v25_v37 = vld [vmem:[%s802_s1 + $0x68] sm:$0xff]  ;;  %v20_v38 = vld [vmem:[%s802_s1 + $0x40] sm:$0xff]  ;;  %v30_v44 = vld [vmem:[%s802_s1 + $0x90] sm:$0xff] }
   0x9   :  { %v33_v39 = vld [vmem:[%s802_s1 + $0xa8] sm:$0xff]  ;;  %v26_v48 = vld [vmem:[%s802_s1 + $0x70] sm:$0xff]  ;;  %v31_v50 = vld [vmem:[%s802_s1 + $0x98] sm:$0xff] }
   0xa   :  { %282 = vrot.lane.b32.xlu1 %v518_v2, %s605_s13  ;;  %43 = vrot.lane.b32.xlu0 %v39_v3, %s605_s13  ;;  %v17_v47 = vld [vmem:[%s802_s1 + $0x28] sm:$0xff]  ;;  %v27_v51 = vld [vmem:[%s802_s1 + $0x78] sm:$0xff] }
   0xb   :  { %v21_v49 = vld [vmem:[%s802_s1 + $0x48] sm:$0xff]  ;;  %v28_v52 = vld [vmem:[%s802_s1 + $0x80] sm:$0xff]  ;;  %v35_v53 = vld [vmem:[%s802_s1 + $0xb8] sm:$0xff] }
   0xc   :  { %v29_v54 = vld [vmem:[%s802_s1 + $0x88] sm:$0xff] }
   0xd   :  { %v37_v57 = vld [vmem:[%s802_s1 + $0xc8] sm:$0xff] }
  0x74   :  { %v285_v4 = vpop.permute.xlu1 %284  ;;  %v46_v5 = vpop.permute.xlu0 %45 }
  0x75   :  { %v51_v6 = vsel %vm49_vm0, 0.0, %v46_v5  ;;  %v289_v7 = vsel %vm49_vm0, 0.0, %v285_v4  ;;  %v36_v4 = vld [vmem:[%s802_s1 + $0xc0] sm:$0xff] }
  0x76   :  { %504 = vmatpush.msk.msra.mxu1 %vm52_vm1, %v51_v6  ;;  %v291_v8 = vsel %vm52_vm1, %v289_v7, 0.0  ;;  %v54_v15 = vsel %vm52_vm1, %v51_v6, 0.0 }
  0x7c   :  { %v283_v9 = vpop.permute.xlu1 %282  ;;  %v44_v10 = vpop.permute.xlu0 %43 }
  0x7d   :  { %v288_v11 = vsel %vm49_vm0, 0.0, %v283_v9  ;;  %v50_v12 = vsel %vm49_vm0, 0.0, %v44_v10 }
  0x7e   :  { %v290_v13 = vsel %vm52_vm1, %v288_v11, 0.0  ;;  %v53_v14 = vsel %vm52_vm1, %v50_v12, 0.0  ;;  %505 = vmatpush.msk.msra.mxu1 %vm52_vm1, %v50_v12 }
  0x7f   :  { %v570_v16 = vpack.i.bf16 %v290_v13, %v291_v8  ;;  %v555_v17 = vpack.i.bf16 %v53_v14, %v54_v15  ;;  %506 = vmatmul.msk.f32.vlgmr.msra.gmra.mxu1 %vm63_vm2, %v648_v18 }
  0x81   :  { %571 = vrot.lane.b32.xlu1 %v570_v16, %s606_s0  ;;  %566 = vrot.lane.b32.xlu0 %v570_v16, %s607_s18 }
  0x82   :  { %556 = vrot.lane.b32.xlu2 %v555_v17, %s607_s18  ;;  %s486_s18 = sshll.u32 %s803_s2, 4  ;;  %s487_s18 = int_to_ptr.hbm [resolvable:$true] %s486_s18 }
  0x87   :  { %507 = vmatmul.msk.f32.gmra.mxu1 %vm63_vm2, %v655_v19 }
  0x89   :  { %257 = vperm.xlu1 %577, %v34_v33   ;;  %247 = vperm.xlu0 %576, %v32_v34  }
  0x8a   :  { %561 = vrot.lane.b32.xlu2 %v555_v17, %s606_s0 }
  0x8f   :  { %508 = vmatmul.msk.f32.gmra.mxu1 %vm63_vm2, %v662_v20 }
  0x91   :  { %252 = vperm.xlu1 %577, %v33_v39  }
  0x92   :  { %237 = vperm.xlu2 %575, %v30_v44  }
  0x97   :  { %509 = vmatmul.msk.f32.gmra.mxu1 %vm63_vm2, %v677_v26 }
  0x9a   :  { %242 = vperm.xlu2 %575, %v31_v50  }
  0xa2   :  { %262 = vperm.xlu2 %575, %v35_v53  }
  0xdc   :  { %v557_v21 = vpop.permute.xlu2 %556 }
  0xdd   :  { %v558_v22 = vunpack.i.l.bf16 %v557_v21  ;;  %v559_v23 = vunpack.i.h.bf16 %v557_v21 }
  0xdf   :  { %96 = vmatpush.msra.mxu0 %v558_v22  ;;  %544 = vmatpush.msra.mxu3 %v558_v22 }
  0xe1   :  { %97 = vmatpush.msra.mxu0 %v559_v23  ;;  %545 = vmatpush.msra.mxu3 %v559_v23 }
  0xe2   :  { %502 = vmatmul.msk.f32.vlgmr.msra.gmra.mxu3 %vm63_vm2, %v669_v24  ;;  %498 = vmatmul.msk.f32.vlgmr.msra.gmra.mxu0 %vm63_vm2, %v18_v25 }
  0xe3   :  { %526 = vmatpush.msk.msrb.mxu0 %vm52_vm1, %v289_v7  ;;  %546 = vmatpush.msk.msrb.mxu3 %vm52_vm1, %v51_v6 }
  0xe4   :  { %v562_v27 = vpop.permute.xlu2 %561 }
  0xe5   :  { %527 = vmatpush.msk.msrb.mxu0 %vm52_vm1, %v288_v11  ;;  %547 = vmatpush.msk.msrb.mxu3 %vm52_vm1, %v50_v12  ;;  %v563_v28 = vunpack.i.l.bf16 %v562_v27  ;;  %v564_v29 = vunpack.i.h.bf16 %v562_v27 }
  0xe7   :  { %208 = vmatpush.msra.mxu2 %v563_v28 }
  0xe9   :  { %209 = vmatpush.msra.mxu2 %v564_v29 }
  0xea   :  { %503 = vmatmul.msk.f32.gmra.mxu3 %vm63_vm2, %v691_v30  ;;  %512 = vmatmul.msk.f32.vlgmr.msra.gmra.mxu2 %vm63_vm2, %v24_v31 }
  0xeb   :  { %499 = vmatmul.msk.f32.gmra.mxu0 %vm63_vm2, %v19_v32  ;;  %456 = vmatpush.msrb.mxu2 %v37_v57 }
  0xec   :  { %v238_v10 = vpop.permute.xlu2 %237 }
  0xed   :  { %457 = vmatpush.msrb.mxu2 %v36_v4 }
  0xf2   :  { %510 = vmatmul.msk.f32.vlgmr.msrb.gmra.mxu3 %vm63_vm2, %v16_v36  ;;  %513 = vmatmul.msk.f32.gmra.mxu2 %vm63_vm2, %v25_v37 }
  0xf3   :  { %v572_v40 = vpop.permute.xlu1 %571  ;;  %v567_v41 = vpop.permute.xlu0 %566  ;;  %500 = vmatmul.msk.f32.gmra.mxu0 %vm63_vm2, %v20_v38 }
  0xf4   :  { %v568_v42 = vunpack.i.l.bf16 %v567_v41  ;;  %v573_v43 = vunpack.i.l.bf16 %v572_v40  ;;  %v569_v45 = vunpack.i.h.bf16 %v567_v41  ;;  %v574_v46 = vunpack.i.h.bf16 %v572_v40  ;;  %v243_v28 = vpop.permute.xlu2 %242 }
  0xf6   :  { %314 = vmatpush.msra.mxu3 %v568_v42  ;;  %390 = vmatpush.msrb.mxu1 %v573_v43 }
  0xf8   :  { %315 = vmatpush.msra.mxu3 %v569_v45  ;;  %391 = vmatpush.msrb.mxu1 %v574_v46 }
  0xf9   :  { %534 = vmatmul.msk.f32.vlgmr.msrb.gmra.mxu1 %vm63_vm2, %v24_v31 }
  0xfa   :  { %511 = vmatmul.msk.f32.gmra.mxu3 %vm63_vm2, %v17_v47  ;;  %514 = vmatmul.msk.f32.gmra.mxu2 %vm63_vm2, %v26_v48 }
  0xfb   :  { %501 = vmatmul.msk.f32.gmra.mxu0 %vm63_vm2, %v21_v49  ;;  %v258_v15 = vpop.permute.xlu1 %257 }
  0xfc   :  { %v152_v55 = vpop.f32.mrf.mxu1  ;;  %v263_v45 = vpop.permute.xlu2 %262 }
 0x101   :  { %535 = vmatmul.msk.f32.gmra.mxu1 %vm63_vm2, %v25_v37 }
 0x102   :  { %515 = vmatmul.msk.f32.gmra.mxu2 %vm63_vm2, %v27_v51  ;;  %520 = vmatmul.msk.f32.vlgmr.msra.gmra.mxu3 %vm63_vm2, %v18_v25 }
 0x103   :  { %528 = vmatmul.msk.f32.vlgmr.msrb.gmra.mxu0 %vm63_vm2, %v648_v18  ;;  %v253_v35 = vpop.permute.xlu1 %252 }
 0x104   :  { %v155_v56 = vpop.f32.mrf.mxu1 }
 0x109   :  { %536 = vmatmul.msk.f32.gmra.mxu1 %vm63_vm2, %v26_v48 }
 0x10a   :  { %516 = vmatmul.msk.f32.gmra.mxu2 %vm63_vm2, %v28_v52  ;;  %521 = vmatmul.msk.f32.gmra.mxu3 %vm63_vm2, %v19_v32 }
 0x10b   :  { %529 = vmatmul.msk.f32.gmra.mxu0 %vm63_vm2, %v655_v19  ;;  %v248_v19 = vpop.permute.xlu0 %247 }
 0x10c   :  { %v158_v61 = vpop.f32.mrf.mxu1 }
 0x111   :  { %537 = vmatmul.msk.f32.gmra.mxu1 %vm63_vm2, %v27_v51 }
 0x112   :  { %517 = vmatmul.msk.f32.gmra.mxu2 %vm63_vm2, %v29_v54  ;;  %522 = vmatmul.msk.f32.gmra.mxu3 %vm63_vm2, %v20_v38 }
 0x113   :  { %530 = vmatmul.msk.f32.gmra.mxu0 %vm63_vm2, %v662_v20 }
 0x114   :  { %v161_v1 = vpop.f32.mrf.mxu1 }
 0x119   :  { %538 = vmatmul.msk.f32.gmra.mxu1 %vm63_vm2, %v28_v52 }
 0x11a   :  { %523 = vmatmul.msk.f32.gmra.mxu3 %vm63_vm2, %v21_v49 }
 0x11b   :  { %531 = vmatmul.msk.f32.gmra.mxu0 %vm63_vm2, %v677_v26 }
 0x121   :  { %539 = vmatmul.msk.f32.gmra.mxu1 %vm63_vm2, %v29_v54 }
 0x122   :  { %524 = vmatmul.msk.f32.gmra.mxu3 %vm63_vm2, %v669_v24 }
 0x123   :  { %532 = vmatmul.msk.f32.gmra.mxu0 %vm63_vm2, %v16_v36 }
 0x12a   :  { %525 = vmatmul.msk.f32.gmra.mxu3 %vm63_vm2, %v691_v30 }
 0x12b   :  { %533 = vmatmul.msk.f32.gmra.mxu0 %vm63_vm2, %v17_v47 }
 0x15f   :  { %v99_v58 = vpop.f32.mrf.mxu0 }
 0x160   :  { %v153_v16 = vadd.f32 %v152_v55, %v99_v58 }
 0x165   :  { %v111_v59 = vpop.f32.mrf.mxu3 }
 0x168   :  { %v102_v60 = vpop.f32.mrf.mxu0 }
 0x169   :  { %v156_v30 = vadd.f32 %v155_v56, %v102_v60 }
 0x16d   :  { %v114_v62 = vpop.f32.mrf.mxu3  ;;  %v211_v63 = vpop.f32.mrf.mxu2 }
 0x16e   :  { %v229_v20 = vadd.f32 %v211_v63, %v153_v16 }
 0x170   :  { %v105_v0 = vpop.f32.mrf.mxu0  ;;  %v265_v25 = vadd.f32 %v238_v10, %v229_v20 }
 0x171   :  { %v159_v14 = vadd.f32 %v158_v61, %v105_v0 }
 0x175   :  { %v164_v2 = vpop.f32.mrf.mxu3  ;;  %v214_v3 = vpop.f32.mrf.mxu2 }
 0x176   :  { %v393_v6 = vpop.f32.mrf.mxu1  ;;  %v165_v21 = vadd.f32 %v164_v2, %v111_v59  ;;  %v230_v36 = vadd.f32 %v214_v3, %v156_v30 }
 0x178   :  { %v108_v5 = vpop.f32.mrf.mxu0  ;;  %v266_v43 = vadd.f32 %v243_v28, %v230_v36 }
 0x179   :  { %v162_v26 = vadd.f32 %v161_v1, %v108_v5 }
 0x17d   :  { %v167_v7 = vpop.f32.mrf.mxu3  ;;  %v217_v8 = vpop.f32.mrf.mxu2 }
 0x17e   :  { %v396_v11 = vpop.f32.mrf.mxu1  ;;  %v231_v17 = vadd.f32 %v217_v8, %v159_v14  ;;  %v168_v38 = vadd.f32 %v167_v7, %v114_v62 }
 0x180   :  { %v352_v9 = vpop.f32.mrf.mxu0  ;;  %v267_v22 = vadd.f32 %v248_v19, %v231_v17 }
 0x182   :  { %v271_v31 = vmax.f32 %v265_v25, %v267_v22 }
 0x185   :  { %v220_v12 = vpop.f32.mrf.mxu2  ;;  %v317_v13 = vpop.f32.mrf.mxu3 }
 0x186   :  { %v399_v29 = vpop.f32.mrf.mxu1  ;;  %v232_v32 = vadd.f32 %v220_v12, %v162_v26  ;;  %v353_v54 = vadd.f32 %v352_v9, %v317_v13 }
 0x188   :  { %v355_v18 = vpop.f32.mrf.mxu0  ;;  %v268_v39 = vadd.f32 %v253_v35, %v232_v32  ;;  %v411_v58 = vadd.f32 %v393_v6, %v353_v54 }
 0x18a   :  { %v272_v46 = vmax.f32 %v266_v43, %v268_v39  ;;  %v417_v63 = vadd.f32 %v411_v58, %v238_v10 }
 0x18d   :  { %v223_v23 = vpop.f32.mrf.mxu2  ;;  %v320_v24 = vpop.f32.mrf.mxu3 }
 0x18e   :  { %v233_v27 = vadd.f32 %v223_v23, %v165_v21  ;;  %v402_v49 = vpop.f32.mrf.mxu1  ;;  %v356_v0 = vadd.f32 %v355_v18, %v320_v24 }
 0x190   :  { %v269_v33 = vadd.f32 %v258_v15, %v233_v27  ;;  %v358_v34 = vpop.f32.mrf.mxu0  ;;  %v412_v7 = vadd.f32 %v396_v11, %v356_v0  ;;  %v578_v11 = vld [vmem:[%s802_s1 + $0xd0] ss:$0 sm:$0xff] }
 0x192   :  { %v273_v37 = vmax.f32 %v271_v31, %v269_v33  ;;  %v418_v17 = vadd.f32 %v412_v7, %v243_v28 }
 0x194   :  { %v275_v40 = vmax.f32 %v273_v37, 0.0 }
 0x195   :  { %v226_v41 = vpop.f32.mrf.mxu2  ;;  %v323_v42 = vpop.f32.mrf.mxu3 }
 0x196   :  { %v234_v44 = vadd.f32 %v226_v41, %v168_v38  ;;  %540 = vmatmul.msk.f32.vlgmr.msrb.gmra.mxu2 %vm63_vm2, %v275_v40  ;;  %v359_v53 = vadd.f32 %v358_v34, %v323_v42  ;;  %v405_v57 = vpop.f32.mrf.mxu1 }
 0x198   :  { %v270_v47 = vadd.f32 %v263_v45, %v234_v44  ;;  %v361_v48 = vpop.f32.mrf.mxu0  ;;  %v413_v56 = vadd.f32 %v399_v29, %v359_v53 }
 0x19a   :  { %v274_v50 = vmax.f32 %v272_v46, %v270_v47  ;;  %v419_v60 = vadd.f32 %v413_v56, %v248_v19 }
 0x19c   :  { %v276_v51 = vmax.f32 %v274_v50, 0.0  ;;  %v423_v2 = vmax.f32 %v417_v63, %v419_v60 }
 0x19d   :  { %v326_v52 = vpop.f32.mrf.mxu3 }
 0x19e   :  { %541 = vmatmul.msk.f32.gmra.mxu2 %vm63_vm2, %v276_v51  ;;  %v362_v61 = vadd.f32 %v361_v48, %v326_v52  ;;  %v408_v14 = vpop.f32.mrf.mxu1 }
 0x1a0   :  { %v364_v55 = vpop.f32.mrf.mxu0  ;;  %v414_v3 = vadd.f32 %v402_v49, %v362_v61 }
 0x1a2   :  { %v420_v9 = vadd.f32 %v414_v3, %v253_v35 }
 0x1a4   :  { %v424_v19 = vmax.f32 %v418_v17, %v420_v9 }
 0x1a5   :  { %v329_v59 = vpop.f32.mrf.mxu3 }
 0x1a6   :  { %v365_v62 = vadd.f32 %v364_v55, %v329_v59 }
 0x1a8   :  { %v415_v1 = vadd.f32 %v405_v57, %v365_v62  ;;  %v367_v5 = vpop.f32.mrf.mxu0 }
 0x1aa   :  { %v421_v4 = vadd.f32 %v415_v1, %v258_v15 }
 0x1ac   :  { %v425_v8 = vmax.f32 %v423_v2, %v421_v4 }
 0x1ad   :  { %v332_v12 = vpop.f32.mrf.mxu3 }
 0x1ae   :  { %v368_v13 = vadd.f32 %v367_v5, %v332_v12  ;;  %v427_v16 = vmax.f32 %v425_v8, 0.0 }
 0x1b0   :  { %v416_v6 = vadd.f32 %v408_v14, %v368_v13  ;;  %542 = vmatmul.msk.f32.gmra.mxu2 %vm63_vm2, %v427_v16 }
 0x1b2   :  { %v422_v20 = vadd.f32 %v416_v6, %v263_v45 }
 0x1b4   :  { %v426_v10 = vmax.f32 %v424_v19, %v422_v20 }
 0x1b6   :  { %v428_v18 = vmax.f32 %v426_v10, 0.0 }
 0x1b8   :  { %543 = vmatmul.msk.f32.gmra.mxu2 %vm63_vm2, %v428_v18 }
 0x219   :  { %v459_v15 = vpop.f32.mrf.mxu2 }
 0x21a   :  { %v460_v21 = vadd.f32 %v578_v11, %v459_v15 }
 0x21c   :  { %v471_v22 = vmax.f32 %v460_v21, 0.0 }
 0x21e   :  { %476 = vst.msk [vmem:[#allocation2] sm:$0xff] %vm475_vm3, %v471_v22 }
 0x221   :  { %v462_v23 = vpop.f32.mrf.mxu2 }
 0x222   :  { %v463_v24 = vadd.f32 %v578_v11, %v462_v23 }
 0x224   :  { %v472_v25 = vmax.f32 %v463_v24, 0.0 }
 0x226   :  { %477 = vst.msk [vmem:[#allocation2 + $0x8] sm:$0xff] %vm475_vm3, %v472_v25 }
 0x233   :  { %v465_v26 = vpop.f32.mrf.mxu2 }
 0x234   :  { %v466_v27 = vadd.f32 %v578_v11, %v465_v26 }
 0x236   :  { %v473_v28 = vmax.f32 %v466_v27, 0.0 }
 0x238   :  { %478 = vst.msk [vmem:[#allocation2 + $0x10] sm:$0xff] %vm475_vm3, %v473_v28 }
 0x23b   :  { %v468_v29 = vpop.f32.mrf.mxu2 }
 0x23c   :  { %v469_v30 = vadd.f32 %v578_v11, %v468_v29 }
 0x23e   :  { %v474_v31 = vmax.f32 %v469_v30, 0.0 }
 0x240   :  { %479 = vst.msk [vmem:[#allocation2 + $0x18] sm:$0xff] %vm475_vm3, %v474_v31 }
 0x241   :  { %492 = dma.vmem_to_hbm [thread:$0]  %s485_s17, 512, %s487_s18, [#allocation3], %s610_s19, %s610_s19, %s611_s20  }
 0x242   :  { %603 = dma.done.wait [#allocation3], 512  }
 0x243   :  { %604 = vsyncadd [#allocation3], 4294966784 }
 0x244   :  { %497 = vsyncpa [#allocation3], 1 }

</bundles_post_ra>
